<compile_context>
chip_gen: v7x
topology: tpu7x:2x2x1
jax: 0.10.0
libtpu: 0.0.40
codegen_flags: <defaults>
</compile_context>

<pallas_src>
import functools

import jax
import jax.numpy as jnp
from jax import lax
from jax.experimental import pallas as pl
from jax.experimental.pallas import tpu as pltpu

_LANE = 128
_SUBLANE = 8
_MAX_TILE_C = 2048     # cap on the lane-dim tile
_MAX_TILE_B = 1024     # bounds whole-tile f32 temporaries in the body


def _vmem_budgets():
    """(input_dma_budget_bytes, vmem_limit_bytes), sized per TPU generation."""
    try:
        cap = int(pltpu.get_tpu_info().vmem_capacity_bytes)
    except Exception:
        cap = 64 * 1024 * 1024                     # assume the smallest (v7x-like) part
    if cap >= 100 * 1024 * 1024:                   # v5e / v6e: 128 MiB VMEM
        return 32 * 1024 * 1024, 96 * 1024 * 1024
    return 8 * 1024 * 1024, 44 * 1024 * 1024       # v7x: 64 MiB VMEM -> keep headroom


def _awl_kernel(x_ref, y_ref, neg_ref, pos_ref, *,
                batch, tile_b, n_b_inner, needs_mask):
    """One (tile_b, tile_c) tile of the loss.

    Grid = (batch_split p, class_tiles ci, batch_tiles bi).  bi (last,
    "arbitrary") is a reduction accumulated into the resident (1, tile_c)
    output blocks.  The per-class weight is applied in the XLA epilogue, so the
    kernel only accumulates the two unweighted partial sums:
        neg[c] += sum_b (1-y) * log(1 - sigmoid(x))
        pos[c] += sum_b   y   * log(sigmoid(x))
    """
    p = pl.program_id(0)
    bi = pl.program_id(2)

    @pl.when(bi == 0)
    def _init():
        neg_ref[...] = jnp.zeros_like(neg_ref)
        pos_ref[...] = jnp.zeros_like(pos_ref)

    # Stream native dtypes; cast once inside the kernel.
    x = x_ref[...].astype(jnp.float32)
    y = y_ref[...].astype(jnp.float32)

    # Stable shared-softplus form: one exp + one log1p on the EUP.
    s = jnp.log1p(jnp.exp(-jnp.abs(x)))            # softplus(-|x|)
    log_sig = -(jnp.maximum(-x, 0.0) + s)          # log(sigmoid(x))
    log_nsg = -(jnp.maximum(x, 0.0) + s)           # log(1 - sigmoid(x))
    loss_pos = y * log_sig
    loss_neg = (1.0 - y) * log_nsg

    def _accumulate(lneg, lpos):
        neg_ref[...] += jnp.sum(lneg, axis=0, keepdims=True)
        pos_ref[...] += jnp.sum(lpos, axis=0, keepdims=True)

    if needs_mask:
        g = p * n_b_inner + bi                     # logical global batch-block index

        @pl.when((g + 1) * tile_b > batch)         # ragged / overshoot tiles only
        def _edge():
            row = g * tile_b + lax.broadcasted_iota(jnp.int32, loss_pos.shape, 0)
            valid = row < batch                    # mask BEFORE the axis-0 sum
            _accumulate(jnp.where(valid, loss_neg, 0.0),
                        jnp.where(valid, loss_pos, 0.0))

        @pl.when((g + 1) * tile_b <= batch)        # interior tiles: no mask work
        def _interior():
            _accumulate(loss_neg, loss_pos)
    else:
        _accumulate(loss_neg, loss_pos)


@functools.partial(jax.jit, static_argnames=("max_tile_b",))
def adaptive_weighted_loss_forward(x, y, weight_per_class, *, max_tile_b=None):
    """Functional AdaptiveWeightedLoss.forward -> scalar loss."""
    B, C = x.shape
    in_budget, vmem_limit = _vmem_budgets()

    # ---- class tiling: lane-dense multiple-of-128 tiles (full C if ragged) ----
    if C % _LANE == 0:
        tile_c = min(C, _MAX_TILE_C)
        while C % tile_c:
            tile_c -= _LANE
    else:
        tile_c = C                                 # full extent -> always legal
    n_c = C // tile_c

    # ---- batch tiling: 2 inputs x 2 pipeline buffers within the VMEM budget ----
    row_bytes = tile_c * (x.dtype.itemsize + y.dtype.itemsize)
    tile_b = (in_budget // (2 * row_bytes)) // _SUBLANE * _SUBLANE
    tile_b = int(max(_SUBLANE, min(tile_b, _MAX_TILE_B)))
    if max_tile_b is not None:                     # test hook / manual override
        tile_b = min(tile_b, max(_SUBLANE, int(max_tile_b)))
    if B <= tile_b:
        tile_b = B                                 # full extent -> always legal
    n_b = pl.cdiv(B, tile_b)

    # ---- leading "parallel" batch-split axis so a 2-TC chip never idles ----
    n_p = 2 if n_b >= 2 else 1
    n_b_inner = pl.cdiv(n_b, n_p)
    needs_mask = (B % tile_b != 0) or (n_p * n_b_inner != n_b)

    if n_p * n_b_inner == n_b:
        def xy_map(p, ci, bi):
            return (p * n_b_inner + bi, ci)
    else:                                          # odd split: clamp the overshoot
        def xy_map(p, ci, bi):                     # block; kernel masks it fully
            return (jnp.minimum(p * n_b_inner + bi, n_b - 1), ci)

    kernel = functools.partial(_awl_kernel, batch=B, tile_b=tile_b,
                               n_b_inner=n_b_inner, needs_mask=needs_mask)

    neg_pc, pos_pc = pl.pallas_call(
        kernel,
        out_shape=(jax.ShapeDtypeStruct((n_p, 1, C), jnp.float32),
                   jax.ShapeDtypeStruct((n_p, 1, C), jnp.float32)),
        grid=(n_p, n_c, n_b_inner),
        in_specs=[
            pl.BlockSpec((tile_b, tile_c), xy_map),    # x, native dtype
            pl.BlockSpec((tile_b, tile_c), xy_map),    # y, native dtype
        ],
        out_specs=[
            pl.BlockSpec((None, 1, tile_c), lambda p, ci, bi: (p, 0, ci)),
            pl.BlockSpec((None, 1, tile_c), lambda p, ci, bi: (p, 0, ci)),
        ],
        compiler_params=pltpu.CompilerParams(
            dimension_semantics=("parallel", "parallel", "arbitrary"),
            vmem_limit_bytes=vmem_limit,
        ),
    )(x, y)

    # Tiny XLA epilogue: apply the (detached) per-class weight and reduce.
    w = weight_per_class.astype(jnp.float32)
    pos_per_class = jnp.sum(pos_pc, axis=(0, 1))       # (C,)
    return -(jnp.sum(neg_pc) + jnp.sum(pos_per_class * w))


if __name__ == "__main__":
    key = jax.random.PRNGKey(0)
    kx, ky = jax.random.split(key)

    B, C = 8, 256
    x = jax.random.normal(kx, (B, C), dtype=jnp.float32)              # logits
    y = (jax.random.uniform(ky, (B, C)) > 0.5).astype(jnp.float32)    # multi-hot targets

    # Module state: weight_per_class is lazily init'd to ones(C) * initial_weight.
    initial_weight = 1.0
    weight_per_class = jnp.full((C,), initial_weight, jnp.float32)

    def reference(xx, yy, w):                          # literal PyTorch formula
        xs_pos = jax.nn.sigmoid(xx)
        return -(((1.0 - yy) * jnp.log(1.0 - xs_pos)
                  + yy * jnp.log(xs_pos) * w[None, :])).sum()

    # 1) single-tile path.
    loss = jax.block_until_ready(adaptive_weighted_loss_forward(x, y, weight_per_class))
    ref = reference(x, y, weight_per_class)
    assert loss.shape == () and bool(jnp.isfinite(loss))
    assert bool(jnp.allclose(loss, ref, rtol=1e-5, atol=1e-4)), (loss, ref)

    # 2) multi-tile path: ragged last batch tile + 2-way batch split + clamped block.
    B2 = 20
    kx2, ky2 = jax.random.split(jax.random.PRNGKey(1))
    x2 = jax.random.normal(kx2, (B2, C), dtype=jnp.float32)
    y2 = (jax.random.uniform(ky2, (B2, C)) > 0.5).astype(jnp.float32)
    loss2 = jax.block_until_ready(
        adaptive_weighted_loss_forward(x2, y2, weight_per_class, max_tile_b=8))
    ref2 = reference(x2, y2, weight_per_class)
    assert bool(jnp.allclose(loss2, ref2, rtol=1e-5, atol=1e-3)), (loss2, ref2)

    # 3) saturation robustness: extreme logits stay finite (naive formula would NaN).
    x3 = x2 * 40.0
    loss3 = jax.block_until_ready(
        adaptive_weighted_loss_forward(x3, y2, weight_per_class, max_tile_b=8))
    assert bool(jnp.isfinite(loss3))

    print("KERNEL_OK")
</pallas_src>

<mosaic_0001>
module attributes {stable_mosaic.version = 11 : i64} {
  func.func @_awl_kernel(%arg0: i32, %arg1: i32, %arg2: i32, %arg3: memref<8x256xf32, #tpu.memory_space<vmem>>, %arg4: memref<8x256xf32, #tpu.memory_space<vmem>>, %arg5: memref<1x1x256xf32, #tpu.memory_space<vmem>>, %arg6: memref<1x1x256xf32, #tpu.memory_space<vmem>>) attributes {dimension_semantics = [#tpu.dimension_semantics<parallel>, #tpu.dimension_semantics<parallel>, #tpu.dimension_semantics<arbitrary>], iteration_bounds = array<i64: 1, 1, 1>, scalar_prefetch = 0 : i64, scratch_operands = 0 : i64, tpu.core_type = #tpu.core_type<tc>, window_params = [{transform_indices = @transform_0, window_bounds = array<i64: 8, 256>}, {transform_indices = @transform_1, window_bounds = array<i64: 8, 256>}, {transform_indices = @transform_2, window_bounds = array<i64: 1, 1, 256>}, {transform_indices = @transform_3, window_bounds = array<i64: 1, 1, 256>}]} {
    %c0_i32 = arith.constant 0 : i32
    %0 = arith.cmpi eq, %arg2, %c0_i32 : i32
    %1 = arith.extui %0 : i1 to i32
    %c0_i32_0 = arith.constant 0 : i32
    %2 = arith.cmpi ne, %1, %c0_i32_0 : i32
    scf.if %2 {
      %cst_24 = arith.constant 0.000000e+00 : f32
      %42 = vector.broadcast %cst_24 : f32 to vector<1x256xf32>
      %c0_25 = arith.constant 0 : index
      %c0_26 = arith.constant 0 : index
      %c0_27 = arith.constant 0 : index
      %43 = vector.load %arg5[%c0_25, %c0_26, %c0_27] : memref<1x1x256xf32, #tpu.memory_space<vmem>>, vector<1x1x256xf32>
      %44 = vector.shape_cast %43 : vector<1x1x256xf32> to vector<1x256xf32>
      %45 = vector.shape_cast %42 : vector<1x256xf32> to vector<1x1x256xf32>
      tpu.vector_store %arg5[%c0_25, %c0_26, %c0_27], %45 {strides = array<i32>} : memref<1x1x256xf32, #tpu.memory_space<vmem>>, vector<1x1x256xf32>,
      %cst_28 = arith.constant 0.000000e+00 : f32
      %46 = vector.broadcast %cst_28 : f32 to vector<1x256xf32>
      %c0_29 = arith.constant 0 : index
      %c0_30 = arith.constant 0 : index
      %c0_31 = arith.constant 0 : index
      %47 = vector.load %arg6[%c0_29, %c0_30, %c0_31] : memref<1x1x256xf32, #tpu.memory_space<vmem>>, vector<1x1x256xf32>
      %48 = vector.shape_cast %47 : vector<1x1x256xf32> to vector<1x256xf32>
      %49 = vector.shape_cast %46 : vector<1x256xf32> to vector<1x1x256xf32>
      tpu.vector_store %arg6[%c0_29, %c0_30, %c0_31], %49 {strides = array<i32>} : memref<1x1x256xf32, #tpu.memory_space<vmem>>, vector<1x1x256xf32>,
    } else {
    }
    %c0 = arith.constant 0 : index
    %c0_1 = arith.constant 0 : index
    %3 = vector.load %arg3[%c0, %c0_1] : memref<8x256xf32, #tpu.memory_space<vmem>>, vector<8x256xf32>
    %c0_2 = arith.constant 0 : index
    %c0_3 = arith.constant 0 : index
    %4 = vector.load %arg4[%c0_2, %c0_3] : memref<8x256xf32, #tpu.memory_space<vmem>>, vector<8x256xf32>
    %5 = math.absf %3 : vector<8x256xf32>
    %cst = arith.constant 0.000000e+00 : f32
    %6 = vector.broadcast %cst : f32 to vector<8x256xf32>
    %7 = arith.subf %6, %5 : vector<8x256xf32>
    %8 = math.exp %7 : vector<8x256xf32>
    %9 = math.log1p %8 : vector<8x256xf32>
    %cst_4 = arith.constant 0.000000e+00 : f32
    %10 = vector.broadcast %cst_4 : f32 to vector<8x256xf32>
    %11 = arith.subf %10, %3 : vector<8x256xf32>
    %cst_5 = arith.constant 0.000000e+00 : f32
    %12 = vector.broadcast %cst_5 : f32 to vector<8x256xf32>
    %13 = arith.maximumf %11, %12 : vector<8x256xf32>
    %14 = arith.addf %13, %9 : vector<8x256xf32>
    %cst_6 = arith.constant 0.000000e+00 : f32
    %15 = vector.broadcast %cst_6 : f32 to vector<8x256xf32>
    %16 = arith.subf %15, %14 : vector<8x256xf32>
    %cst_7 = arith.constant 0.000000e+00 : f32
    %17 = vector.broadcast %cst_7 : f32 to vector<8x256xf32>
    %18 = arith.maximumf %3, %17 : vector<8x256xf32>
    %19 = arith.addf %18, %9 : vector<8x256xf32>
    %cst_8 = arith.constant 0.000000e+00 : f32
    %20 = vector.broadcast %cst_8 : f32 to vector<8x256xf32>
    %21 = arith.subf %20, %19 : vector<8x256xf32>
    %22 = arith.mulf %4, %16 : vector<8x256xf32>
    %cst_9 = arith.constant 1.000000e+00 : f32
    %23 = vector.broadcast %cst_9 : f32 to vector<8x256xf32>
    %24 = arith.subf %23, %4 : vector<8x256xf32>
    %25 = arith.mulf %24, %21 : vector<8x256xf32>
    %c0_10 = arith.constant 0 : index
    %c0_11 = arith.constant 0 : index
    %c0_12 = arith.constant 0 : index
    %26 = vector.load %arg5[%c0_10, %c0_11, %c0_12] : memref<1x1x256xf32, #tpu.memory_space<vmem>>, vector<1x1x256xf32>
    %27 = vector.shape_cast %26 : vector<1x1x256xf32> to vector<1x256xf32>
    %cst_13 = arith.constant dense<0.000000e+00> : vector<256xf32>
    %28 = vector.multi_reduction <add>, %25, %cst_13 [0] : vector<8x256xf32> to vector<256xf32>
    %29 = vector.shape_cast %28 : vector<256xf32> to vector<1x256xf32>
    %30 = arith.addf %27, %29 : vector<1x256xf32>
    %c0_14 = arith.constant 0 : index
    %c0_15 = arith.constant 0 : index
    %c0_16 = arith.constant 0 : index
    %31 = vector.load %arg5[%c0_14, %c0_15, %c0_16] : memref<1x1x256xf32, #tpu.memory_space<vmem>>, vector<1x1x256xf32>
    %32 = vector.shape_cast %31 : vector<1x1x256xf32> to vector<1x256xf32>
    %33 = vector.shape_cast %30 : vector<1x256xf32> to vector<1x1x256xf32>
    tpu.vector_store %arg5[%c0_14, %c0_15, %c0_16], %33 {strides = array<i32>} : memref<1x1x256xf32, #tpu.memory_space<vmem>>, vector<1x1x256xf32>,
    %c0_17 = arith.constant 0 : index
    %c0_18 = arith.constant 0 : index
    %c0_19 = arith.constant 0 : index
    %34 = vector.load %arg6[%c0_17, %c0_18, %c0_19] : memref<1x1x256xf32, #tpu.memory_space<vmem>>, vector<1x1x256xf32>
    %35 = vector.shape_cast %34 : vector<1x1x256xf32> to vector<1x256xf32>
    %cst_20 = arith.constant dense<0.000000e+00> : vector<256xf32>
    %36 = vector.multi_reduction <add>, %22, %cst_20 [0] : vector<8x256xf32> to vector<256xf32>
    %37 = vector.shape_cast %36 : vector<256xf32> to vector<1x256xf32>
    %38 = arith.addf %35, %37 : vector<1x256xf32>
    %c0_21 = arith.constant 0 : index
    %c0_22 = arith.constant 0 : index
    %c0_23 = arith.constant 0 : index
    %39 = vector.load %arg6[%c0_21, %c0_22, %c0_23] : memref<1x1x256xf32, #tpu.memory_space<vmem>>, vector<1x1x256xf32>
    %40 = vector.shape_cast %39 : vector<1x1x256xf32> to vector<1x256xf32>
    %41 = vector.shape_cast %38 : vector<1x256xf32> to vector<1x1x256xf32>
    tpu.vector_store %arg6[%c0_21, %c0_22, %c0_23], %41 {strides = array<i32>} : memref<1x1x256xf32, #tpu.memory_space<vmem>>, vector<1x1x256xf32>,
    return
  }
  func.func @transform_0(%arg0: i32, %arg1: i32, %arg2: i32) -> (i32, i32) {
    %c1_i32 = arith.constant 1 : i32
    %0 = arith.muli %arg0, %c1_i32 : i32
    %1 = arith.addi %0, %arg2 : i32
    %c0_i32 = arith.constant 0 : i32
    return %1, %arg1 : i32, i32
  }
  func.func @transform_1(%arg0: i32, %arg1: i32, %arg2: i32) -> (i32, i32) {
    %c1_i32 = arith.constant 1 : i32
    %0 = arith.muli %arg0, %c1_i32 : i32
    %1 = arith.addi %0, %arg2 : i32
    %c0_i32 = arith.constant 0 : i32
    return %1, %arg1 : i32, i32
  }
  func.func @transform_2(%arg0: i32, %arg1: i32, %arg2: i32) -> (i32, i32, i32) {
    %c0_i32 = arith.constant 0 : i32
    %c0_i32_0 = arith.constant 0 : i32
    return %arg0, %c0_i32, %arg1 : i32, i32, i32
  }
  func.func @transform_3(%arg0: i32, %arg1: i32, %arg2: i32) -> (i32, i32, i32) {
    %c0_i32 = arith.constant 0 : i32
    %c0_i32_0 = arith.constant 0 : i32
    return %arg0, %c0_i32, %arg1 : i32, i32, i32
  }
}

</mosaic_0001>

<bundles_post_ra>
// kernel: adaptive_weighted_loss_forward.1
= control target key start
LH: loop header
LB: loop body
LE: loop exit
PB: predicated region body
PF: predicated region fallthrough
CT: control target
= control target key end

     0   :  { %9 = vsyncpa [#allocation3], 0  ;;  %s327_s0 = inlined_call_operand.hbm [shape: f32[8,256], index: 0, kind: input, shape index: {}]   ;;  %s328_s1 = inlined_call_operand.hbm [shape: f32[8,256], index: 1, kind: input, shape index: {}]   ;;  %s329_s2 = inlined_call_operand.vmem [shape: f32[1,1,256], index: 2, kind: output, shape index: {0}]   ;;  %s330_s3 = inlined_call_operand.vmem [shape: f32[1,1,256], index: 3, kind: output, shape index: {1}]  }
   0x1   :  { %10 = vsyncpa [#allocation5], 0  ;;  %s247_s12 = smov [#allocation2]   ;;  %s248_s14 = smov [#allocation4]  }
   0x2   :  { %s21_s13 = sshll.u32 %s247_s12, 4  ;;  %s35_s15 = sshll.u32 %s248_s14, 4  ;;  %s22_s13 = int_to_ptr.vmem [resolvable:$true] %s21_s13  ;;  %s36_s15 = int_to_ptr.vmem [resolvable:$true] %s35_s15 }
   0x3   :  { %s199_s18 = scalar_lea.hbm %s327_s0, 256 }
   0x4   :  { %p200_p0 = scmp.ne.s32.totalorder %s327_s0, %s199_s18  ;;  %p203_p1 = scmp.lt.u32.totalorder %s199_s18, %s327_s0 }
   0x6   :  { %p205_p2 = pnand %p203_p1, %p200_p0 }
   0x8   :  { %208 = shalt.err (!%p205_p2)
}
   0x9   :  { %s209_s23 = scalar_lea.vmem %s22_s13, 256  ;;  %p214_p4 = scmp.lt.s32.totalorder %s22_s13, %s22_s13 }
   0xa   :  { %p210_p3 = scmp.ne.s32.totalorder %s22_s13, %s209_s23  ;;  %p215_p5 = scmp.lt.s32.totalorder %s209_s23, %s209_s23 }
   0xc   :  { %p216_p6 = por %p215_p5, %p214_p4 }
   0xe   :  { %p217_p7 = pnand %p216_p6, %p210_p3 }
  0x10   :  { %220 = shalt.err (!%p217_p7)
}
  0x11   :  { %24 = dma.hbm_to_vmem [thread:$0]  %s327_s0, 256, %s22_s13, [#allocation3]  }
  0x12   :  { %s221_s28 = scalar_lea.hbm %s328_s1, 256 }
  0x13   :  { %p222_p8 = scmp.ne.s32.totalorder %s328_s1, %s221_s28  ;;  %p225_p9 = scmp.lt.u32.totalorder %s221_s28, %s328_s1 }
  0x15   :  { %p227_p10 = pnand %p225_p9, %p222_p8 }
  0x17   :  { %230 = shalt.err (!%p227_p10)
}
  0x18   :  { %s231_s6 = scalar_lea.vmem %s36_s15, 256  ;;  %p236_p12 = scmp.lt.s32.totalorder %s36_s15, %s36_s15 }
  0x19   :  { %p232_p11 = scmp.ne.s32.totalorder %s36_s15, %s231_s6  ;;  %p237_p13 = scmp.lt.s32.totalorder %s231_s6, %s231_s6 }
  0x1b   :  { %p238_p0 = por %p237_p13, %p236_p12 }
  0x1d   :  { %p239_p1 = pnand %p238_p0, %p232_p11 }
  0x1f   :  { %242 = shalt.err (!%p239_p1)
}
  0x20   :  { %38 = dma.hbm_to_vmem [thread:$0]  %s328_s1, 256, %s36_s15, [#allocation5]  }
  0x21   :  { %243 = dma.done.wait [#allocation3], 256  }
  0x22   :  { %244 = vsyncadd [#allocation3], 4294967040 }
  0x23   :  { %245 = dma.done.wait [#allocation5], 256  }
  0x24   :  { %246 = vsyncadd [#allocation5], 4294967040  ;;  %v51_v0 = vlaneseq  ;;  %v249_v2 = vmov 0.0   ;;  %v57_v3 = vld [vmem:[#allocation2] sm:$0xff]  ;;  %v58_v4 = vld [vmem:[#allocation2 + $0x8] sm:$0xff] }
  0x25   :  { %v61_v5 = vand.u32 2147483647, %v57_v3  ;;  %v62_v6 = vand.u32 2147483647, %v58_v4  ;;  %v87_v20 = vsub.f32 0.0, %v57_v3  ;;  %v88_v22 = vsub.f32 0.0, %v58_v4 }
  0x26   :  { %vm296_vm0 = vcmp.lt.s32.totalorder %v51_v0, 256  ;;  %v59_v25 = vld [vmem:[#allocation4] sm:$0xff]  ;;  %v95_v27 = vmax.f32 %v57_v3, 0.0  ;;  %v96_v31 = vmax.f32 %v58_v4, 0.0  ;;  %v60_v33 = vld [vmem:[#allocation4 + $0x8] sm:$0xff] }
  0x27   :  { %55 = vst.msk [vmem:[%s329_s2] sm:$0x3] %vm296_vm0, %v249_v2  ;;  %56 = vst.msk [vmem:[%s330_s3] sm:$0x3] %vm296_vm0, %v249_v2  ;;  %v63_v7 = vsub.f32 0.0, %v61_v5  ;;  %v64_v8 = vsub.f32 0.0, %v62_v6 }
  0x28   :  { %v89_v28 = vmax.f32 %v87_v20, 0.0  ;;  %v90_v32 = vmax.f32 %v88_v22, 0.0  ;;  %v103_v38 = vsub.f32 1.0, %v59_v25  ;;  %v104_v41 = vsub.f32 1.0, %v60_v33 }
  0x29   :  { %v65_v9 = vmul.f32 1.442695, %v63_v7  ;;  %v67_v10 = vmul.f32 1.442695, %v64_v8  ;;  %v250_v57 = vmov 1966171168  }
  0x2a   :  { %v124_v58 = vunpack.c.l.s4 %v250_v57  ;;  %v127_v6 = vshrl.u32 %v51_v0, 7 }
  0x2b   :  { %191 = vpow2.f32 %v65_v9 }
  0x2c   :  { %193 = vpow2.f32 %v67_v10  ;;  %v125_v5 = vunpack.c.0.s8 %v124_v58 }
  0x2e   :  { %v107_v22 = vld [vmem:[%s329_s2] sm:$0x3] }
  0x2f   :  { %v144_v0 = vld [vmem:[%s330_s3] sm:$0x3] }
  0x35   :  { %v192_v11 = vpop.eup %191 }
  0x36   :  { %v194_v12 = vpop.eup %193  ;;  %v69_v13 = vadd.f32 1.0, %v192_v11  ;;  %v72_v15 = vmul.f32 -0.5, %v192_v11  ;;  %v75_v18 = vand.u32 2147483647, %v192_v11 }
  0x37   :  { %v78_v14 = vadd.f32 1.0, %v194_v12  ;;  %v81_v16 = vmul.f32 -0.5, %v194_v12  ;;  %v84_v21 = vand.u32 2147483647, %v194_v12 }
  0x38   :  { %195 = vlog2.f32 %v69_v13  ;;  %v73_v17 = vadd.f32 1.0, %v72_v15  ;;  %vm76_vm1 = vcmp.lt.f32.partialorder %v75_v18, 0.0004427343  ;;  %v128_v15 = vsub.s32 %v125_v5, %v127_v6 }
  0x39   :  { %197 = vlog2.f32 %v78_v14  ;;  %v82_v19 = vadd.f32 1.0, %v81_v16  ;;  %vm85_vm2 = vcmp.lt.f32.partialorder %v84_v21, 0.0004427343 }
  0x3a   :  { %v74_v23 = vmul.f32 %v192_v11, %v73_v17 }
  0x3b   :  { %v83_v26 = vmul.f32 %v194_v12, %v82_v19 }
  0x42   :  { %v196_v24 = vpop.eup %195 }
  0x43   :  { %v198_v29 = vpop.eup %197  ;;  %v71_v30 = vmul.f32 0.6931472, %v196_v24 }
  0x44   :  { %v80_v34 = vmul.f32 0.6931472, %v198_v29 }
  0x45   :  { %v77_v35 = vsel %vm76_vm1, %v74_v23, %v71_v30 }
  0x46   :  { %v86_v36 = vsel %vm85_vm2, %v83_v26, %v80_v34  ;;  %v97_v37 = vadd.f32 %v95_v27, %v77_v35  ;;  %v91_v39 = vadd.f32 %v89_v28, %v77_v35 }
  0x47   :  { %v98_v40 = vadd.f32 %v96_v31, %v86_v36  ;;  %v92_v42 = vadd.f32 %v90_v32, %v86_v36 }
  0x48   :  { %v99_v43 = vsub.f32 0.0, %v97_v37  ;;  %v93_v44 = vsub.f32 0.0, %v91_v39 }
  0x49   :  { %v100_v45 = vsub.f32 0.0, %v98_v40  ;;  %v94_v46 = vsub.f32 0.0, %v92_v42 }
  0x4a   :  { %v105_v47 = vmul.f32 %v103_v38, %v99_v43  ;;  %v101_v48 = vmul.f32 %v93_v44, %v59_v25 }
  0x4b   :  { %v106_v49 = vmul.f32 %v104_v41, %v100_v45  ;;  %v102_v50 = vmul.f32 %v94_v46, %v60_v33 }
  0x4c   :  { %v108_v51 = vrot.slane %v105_v47, 4  ;;  %v145_v52 = vrot.slane %v101_v48, 4 }
  0x4d   :  { %v114_v53 = vrot.slane %v106_v49, 4  ;;  %v151_v54 = vrot.slane %v102_v50, 4 }
  0x4e   :  { %v109_v55 = vadd.f32 %v108_v51, %v105_v47  ;;  %v146_v56 = vadd.f32 %v145_v52, %v101_v48 }
  0x4f   :  { %v115_v59 = vadd.f32 %v114_v53, %v106_v49  ;;  %v152_v60 = vadd.f32 %v151_v54, %v102_v50 }
  0x50   :  { %v110_v61 = vrot.slane %v109_v55, 2  ;;  %v147_v62 = vrot.slane %v146_v56, 2 }
  0x51   :  { %v116_v63 = vrot.slane %v115_v59, 2  ;;  %v153_v2 = vrot.slane %v152_v60, 2 }
  0x52   :  { %v111_v3 = vadd.f32 %v110_v61, %v109_v55  ;;  %v148_v4 = vadd.f32 %v147_v62, %v146_v56 }
  0x53   :  { %v117_v7 = vadd.f32 %v116_v63, %v115_v59  ;;  %v154_v8 = vadd.f32 %v153_v2, %v152_v60 }
  0x54   :  { %v112_v9 = vrot.slane %v111_v3, 1  ;;  %v149_v10 = vrot.slane %v148_v4, 1 }
  0x55   :  { %v118_v11 = vrot.slane %v117_v7, 1  ;;  %v155_v12 = vrot.slane %v154_v8, 1 }
  0x56   :  { %v113_v13 = vadd.f32 %v112_v9, %v111_v3  ;;  %v150_v14 = vadd.f32 %v149_v10, %v148_v4 }
  0x57   :  { %v119_v16 = vadd.f32 %v118_v11, %v117_v7  ;;  %v156_v17 = vadd.f32 %v155_v12, %v154_v8 }
  0x59   :  { %v122_v18 = vcombine.low %v113_v13, %v119_v16  ;;  %v159_v19 = vcombine.low %v150_v14, %v156_v17 }
  0x5b   :  { %v129_v20 = vrot.slane %v122_v18, %v128_v15  ;;  %v166_v21 = vrot.slane %v159_v19, %v128_v15 }
  0x5d   :  { %v136_v23 = vrot.slane %v129_v20, %v128_v15  ;;  %v173_v24 = vrot.slane %v166_v21, %v128_v15 }
  0x5f   :  { %v138_v25 = vadd.f32 %v136_v23, %v107_v22  ;;  %v175_v26 = vadd.f32 %v173_v24, %v144_v0 }
  0x61   :  { %143 = vst.msk [vmem:[%s329_s2] sm:$0x3] %vm296_vm0, %v138_v25  ;;  %176 = vst.msk [vmem:[%s330_s3] sm:$0x3] %vm296_vm0, %v175_v26 }
  0x62   :  { %185 = vsyncpa [#allocation3], 1 }
  0x63   :  { %186 = vsyncpa [#allocation5], 1 }

</bundles_post_ra>
